<compile_context>
chip_gen: v6e
topology: v6e:2x2x1
jax: 0.10.0
libtpu: 0.0.40
codegen_flags: <defaults>
</compile_context>

<pallas_src>
import functools
import math

import jax
import jax.numpy as jnp
from jax import lax
from jax.experimental import pallas as pl
from jax.experimental.pallas import tpu as pltpu


def _arclinear_kernel(t_ref, xs_ref, wn_ref, o_ref, *,
                      margin, s, min_cos, max_cos, tile_n):
    """One (tb, tn) tile of s * (cos_j + one_hot * (cos(theta_yi + m) - cos_yi))."""
    # xs_ref holds s * normalize(x); wn_ref holds normalize(W); both already in
    # matmul_dtype (prologue work hoisted to the wrapper).  MXU dot contracts
    # the shared feature axis directly (W stays in its natural layout).
    scaled_cos = lax.dot_general(
        xs_ref[...], wn_ref[...],
        dimension_numbers=(((1,), (1,)), ((), ())),
        preferred_element_type=jnp.float32)              # (tb, tn) == s * cos(theta_j)

    tb, tn = scaled_cos.shape
    class_base = pl.program_id(0) * tile_n
    col = lax.broadcasted_iota(jnp.int32, (tb, tn), 1)
    # Compare the column iota against (tgt - class_base): one (tb,1) subtract
    # instead of a full-tile base add.
    one_hot = col == (t_ref[...] - class_base)            # (tb, tn) bool, tile-local

    # Tile-local gather of the target-class logit.  If the target column is not
    # in this class tile the mask is all-False (sum -> 0) and delta is masked
    # out below, so the value never matters.
    scaled_cos_yi = jnp.sum(jnp.where(one_hot, scaled_cos, jnp.float32(0.0)),
                            axis=-1, keepdims=True)       # (tb, 1) == s * cos(theta_yi)
    cos_yi = jnp.clip(scaled_cos_yi * jnp.float32(1.0 / s),
                      jnp.float32(min_cos), jnp.float32(max_cos))

    # cos(acos(c) + m) = c*cos(m) - sqrt(1 - c^2)*sin(m)   (theta in [0, pi])
    sin_yi = jnp.sqrt(jnp.maximum(1.0 - cos_yi * cos_yi, jnp.float32(0.0)))
    scaled_delta = jnp.float32(s) * (cos_yi * jnp.float32(math.cos(margin))
                                     - sin_yi * jnp.float32(math.sin(margin))
                                     - cos_yi)            # (tb, 1)

    out = scaled_cos + jnp.where(one_hot, scaled_delta, jnp.float32(0.0))
    o_ref[...] = out.astype(o_ref.dtype)


def arc_linear_forward(x, W, target, *, margin, s,
                       tile_b=512, tile_n=2048,
                       matmul_dtype=jnp.bfloat16,
                       out_dtype=jnp.bfloat16,
                       vmem_limit_bytes=None):
    """ArcLinear.forward(x, target) -> scaled margin logits (B, nclass)."""
    eps = 0.0001
    B, nfeat = x.shape
    nclass, nfeat_w = W.shape
    assert nfeat == nfeat_w
    tgt = target.reshape(B, 1).astype(jnp.int32)

    # --- Prologue (wrapper): normalize, fold s into x, cast to MXU dtype. ----
    # F.normalize: v / max(||v||, 1e-12) == v * rsqrt(max(||v||^2, 1e-24)).
    eps2 = jnp.float32(1e-24)
    xf = x.astype(jnp.float32)
    wf = W.astype(jnp.float32)
    x_scaled = (jnp.float32(s) * xf
                * lax.rsqrt(jnp.maximum(jnp.sum(xf * xf, axis=-1, keepdims=True), eps2))
                ).astype(matmul_dtype)
    w_norm = (wf
              * lax.rsqrt(jnp.maximum(jnp.sum(wf * wf, axis=-1, keepdims=True), eps2))
              ).astype(matmul_dtype)

    # --- Tile sizes: full extent if small, otherwise (8,128)-aligned caps. ----
    tb = B if B <= tile_b else tile_b
    tn = nclass if nclass <= tile_n else tile_n
    if tb < B:
        assert tb % 8 == 0, "partial batch tile must be a multiple of 8"
    if tn < nclass:
        assert tn % 128 == 0, "partial class tile must be a multiple of 128"

    # Class tiles outer (W block resident across the inner batch sweep),
    # batch tiles inner.
    grid = (pl.cdiv(nclass, tn), pl.cdiv(B, tb))

    in_bytes = jnp.dtype(matmul_dtype).itemsize
    out_bytes = jnp.dtype(out_dtype).itemsize
    if vmem_limit_bytes is None:
        # Double-buffered block footprint + in-kernel f32 temporaries
        # (scaled_cos, iota, mask), capped at ~85% of this generation's VMEM.
        io = 2 * (tb * nfeat * in_bytes + tn * nfeat * in_bytes
                  + tb * 4 + tb * tn * out_bytes)
        temps = 12 * tb * tn
        try:
            cap = int(getattr(pltpu.get_tpu_info(), "vmem_capacity_bytes",
                              64 * 1024 * 1024))
        except Exception:
            cap = 64 * 1024 * 1024  # conservative (v7x per-TC)
        vmem_limit_bytes = int(min(max(int(1.25 * (io + temps)), 32 * 1024 * 1024),
                                   int(0.85 * cap)))

    kernel = functools.partial(
        _arclinear_kernel,
        margin=float(margin), s=float(s),
        min_cos=eps - 1.0, max_cos=1.0 - eps, tile_n=tn)

    cost = pl.CostEstimate(
        flops=2 * B * nclass * nfeat,
        transcendentals=B * grid[0],
        bytes_accessed=(B * nfeat * in_bytes + nclass * nfeat * in_bytes
                        + B * nclass * out_bytes + B * 4))

    return pl.pallas_call(
        kernel,
        out_shape=jax.ShapeDtypeStruct((B, nclass), out_dtype),
        grid=grid,
        in_specs=[
            pl.BlockSpec((tb, 1), lambda j, i: (i, 0)),        # targets (tiny)
            pl.BlockSpec((tb, nfeat), lambda j, i: (i, 0)),    # s * xnorm (bf16)
            pl.BlockSpec((tn, nfeat), lambda j, i: (j, 0)),    # Wnorm (bf16, resident)
        ],
        out_specs=pl.BlockSpec((tb, tn), lambda j, i: (i, j)),  # lane-dense logits tile
        compiler_params=pltpu.CompilerParams(
            # class axis parallel (v7x cores shard W), batch axis arbitrary.
            dimension_semantics=("parallel", "arbitrary"),
            vmem_limit_bytes=vmem_limit_bytes),
        cost_estimate=cost,
    )(tgt, x_scaled, w_norm)


def _reference_logits(x, W, target, margin, s):
    """Pure-JAX f32 reference, same math as the PyTorch module."""
    eps = 0.0001
    xn = x / jnp.maximum(jnp.linalg.norm(x, axis=1, keepdims=True), 1e-12)
    wn = W / jnp.maximum(jnp.linalg.norm(W, axis=1, keepdims=True), 1e-12)
    cos_j = xn @ wn.T
    cos_yi = jnp.take_along_axis(cos_j, target[:, None], axis=1)
    cos_yi = jnp.clip(cos_yi, eps - 1.0, 1.0 - eps)
    cos_yi_m = jnp.cos(jnp.arccos(cos_yi) + margin)
    one_hot = jax.nn.one_hot(target, W.shape[0], dtype=jnp.float32)
    return s * (cos_j + one_hot * (cos_yi_m - cos_yi))


def _make_inputs(key, batch, nfeat, nclass):
    kx, kw, kt = jax.random.split(key, 3)
    x = jax.random.normal(kx, (batch, nfeat), dtype=jnp.float32)
    # Deterministic xavier_uniform_-style init for W (nclass, nfeat).
    bound = math.sqrt(6.0 / (nfeat + nclass))
    W = jax.random.uniform(kw, (nclass, nfeat), dtype=jnp.float32,
                           minval=-bound, maxval=bound)
    target = jax.random.randint(kt, (batch,), 0, nclass, dtype=jnp.int32)
    return x, W, target


if __name__ == "__main__":
    key = jax.random.PRNGKey(0)
    k1, k2 = jax.random.split(key)

    # ---- Case 1: tiny, single-tile (full-extent blocks) -------------------
    batch, nfeat, nclass = 8, 32, 16
    margin, s = 0.5, 30.0
    x, W, target = _make_inputs(k1, batch, nfeat, nclass)
    ref = _reference_logits(x, W, target, margin, s)

    # All-f32 path: tight check against the module semantics.
    out_f32 = arc_linear_forward(x, W, target, margin=margin, s=s,
                                 matmul_dtype=jnp.float32,
                                 out_dtype=jnp.float32)
    jax.block_until_ready(out_f32)
    assert jnp.allclose(out_f32, ref, atol=2e-3, rtol=1e-4)

    # Default perf path (bf16 operands, bf16 logits): loose check.
    out_bf16 = arc_linear_forward(x, W, target, margin=margin, s=s)
    jax.block_until_ready(out_bf16)
    assert jnp.allclose(out_bf16.astype(jnp.float32), ref, atol=0.04 * s, rtol=0.0)

    # ---- Case 2: exercises the tiled grid (class tiles x batch tiles) -----
    batch, nfeat, nclass = 16, 64, 384
    margin, s = 0.2, 10.0
    x, W, target = _make_inputs(k2, batch, nfeat, nclass)
    ref = _reference_logits(x, W, target, margin, s)

    out_f32 = arc_linear_forward(x, W, target, margin=margin, s=s,
                                 tile_b=8, tile_n=128,
                                 matmul_dtype=jnp.float32,
                                 out_dtype=jnp.float32)
    jax.block_until_ready(out_f32)
    assert jnp.allclose(out_f32, ref, atol=2e-3, rtol=1e-4)

    out_bf16 = arc_linear_forward(x, W, target, margin=margin, s=s,
                                  tile_b=8, tile_n=128)
    jax.block_until_ready(out_bf16)
    assert jnp.allclose(out_bf16.astype(jnp.float32), ref, atol=0.04 * s, rtol=0.0)

    print("KERNEL_OK")
</pallas_src>

<mosaic_0001>
module attributes {stable_mosaic.version = 11 : i64} {
  func.func @_arclinear_kernel(%arg0: i32, %arg1: i32, %arg2: memref<8x1xi32, #tpu.memory_space<vmem>>, %arg3: memref<8x32xf32, #tpu.memory_space<vmem>>, %arg4: memref<16x32xf32, #tpu.memory_space<vmem>>, %arg5: memref<8x16xf32, #tpu.memory_space<vmem>>) attributes {dimension_semantics = [#tpu.dimension_semantics<parallel>, #tpu.dimension_semantics<arbitrary>], iteration_bounds = array<i64: 1, 1>, scalar_prefetch = 0 : i64, scratch_operands = 0 : i64, tpu.core_type = #tpu.core_type<tc>, window_params = [{transform_indices = @transform_0, window_bounds = array<i64: 8, 1>}, {transform_indices = @transform_1, window_bounds = array<i64: 8, 32>}, {transform_indices = @transform_2, window_bounds = array<i64: 16, 32>}, {transform_indices = @transform_3, window_bounds = array<i64: 8, 16>}]} {
    %c0 = arith.constant 0 : index
    %c0_0 = arith.constant 0 : index
    %0 = vector.load %arg3[%c0, %c0_0] : memref<8x32xf32, #tpu.memory_space<vmem>>, vector<8x32xf32>
    %c0_1 = arith.constant 0 : index
    %c0_2 = arith.constant 0 : index
    %1 = vector.load %arg4[%c0_1, %c0_2] : memref<16x32xf32, #tpu.memory_space<vmem>>, vector<16x32xf32>
    %cst = arith.constant dense<0.000000e+00> : vector<8x16xf32>
    %2 = tpu.matmul %0, %1, %cst {dimension_numbers = #tpu.dot_dimension_numbers<[1], [1], [0], [0], [0, 0, 1, 0], [], []>} : vector<8x32xf32>, vector<16x32xf32>, vector<8x16xf32> -> vector<8x16xf32>
    %c16_i32 = arith.constant 16 : i32
    %3 = arith.muli %arg0, %c16_i32 : i32
    %4 = tpu.iota {dimensions = array<i32: 1>} : vector<8x16xi32>
    %c0_3 = arith.constant 0 : index
    %c0_4 = arith.constant 0 : index
    %5 = vector.load %arg2[%c0_3, %c0_4] : memref<8x1xi32, #tpu.memory_space<vmem>>, vector<8x1xi32>
    %6 = vector.broadcast %3 : i32 to vector<8x1xi32>
    %7 = arith.subi %5, %6 : vector<8x1xi32>
    %8 = vector.broadcast %7 : vector<8x1xi32> to vector<8x16xi32>
    %9 = arith.cmpi eq, %4, %8 : vector<8x16xi32>
    %cst_5 = arith.constant 0.000000e+00 : f32
    %10 = vector.broadcast %cst_5 : f32 to vector<8x16xf32>
    %11 = arith.select %9, %2, %10 : vector<8x16xi1>, vector<8x16xf32>
    %cst_6 = arith.constant dense<0.000000e+00> : vector<8xf32>
    %12 = vector.multi_reduction <add>, %11, %cst_6 [1] : vector<8x16xf32> to vector<8xf32>
    %13 = vector.shape_cast %12 : vector<8xf32> to vector<8x1xf32>
    %cst_7 = arith.constant 0.0333333351 : f32
    %14 = vector.broadcast %cst_7 : f32 to vector<8x1xf32>
    %15 = arith.mulf %13, %14 : vector<8x1xf32>
    %cst_8 = arith.constant -0.999899983 : f32
    %cst_9 = arith.constant 0.999899983 : f32
    %16 = vector.broadcast %cst_8 : f32 to vector<8x1xf32>
    %17 = arith.maximumf %16, %15 : vector<8x1xf32>
    %18 = vector.broadcast %cst_9 : f32 to vector<8x1xf32>
    %19 = arith.minimumf %18, %17 : vector<8x1xf32>
    %20 = arith.mulf %19, %19 : vector<8x1xf32>
    %cst_10 = arith.constant 1.000000e+00 : f32
    %21 = vector.broadcast %cst_10 : f32 to vector<8x1xf32>
    %22 = arith.subf %21, %20 : vector<8x1xf32>
    %cst_11 = arith.constant 0.000000e+00 : f32
    %23 = vector.broadcast %cst_11 : f32 to vector<8x1xf32>
    %24 = arith.maximumf %22, %23 : vector<8x1xf32>
    %25 = math.sqrt %24 : vector<8x1xf32>
    %cst_12 = arith.constant 0.87758255 : f32
    %26 = vector.broadcast %cst_12 : f32 to vector<8x1xf32>
    %27 = arith.mulf %19, %26 : vector<8x1xf32>
    %cst_13 = arith.constant 0.47942555 : f32
    %28 = vector.broadcast %cst_13 : f32 to vector<8x1xf32>
    %29 = arith.mulf %25, %28 : vector<8x1xf32>
    %30 = arith.subf %27, %29 : vector<8x1xf32>
    %31 = arith.subf %30, %19 : vector<8x1xf32>
    %cst_14 = arith.constant 3.000000e+01 : f32
    %32 = vector.broadcast %cst_14 : f32 to vector<8x1xf32>
    %33 = arith.mulf %32, %31 : vector<8x1xf32>
    %cst_15 = arith.constant 0.000000e+00 : f32
    %34 = vector.shape_cast %33 : vector<8x1xf32> to vector<8x1xf32>
    %35 = vector.broadcast %34 : vector<8x1xf32> to vector<8x16xf32>
    %36 = vector.broadcast %cst_15 : f32 to vector<8x16xf32>
    %37 = arith.select %9, %35, %36 : vector<8x16xi1>, vector<8x16xf32>
    %38 = arith.addf %2, %37 : vector<8x16xf32>
    %c0_16 = arith.constant 0 : index
    %c0_17 = arith.constant 0 : index
    %39 = vector.load %arg5[%c0_16, %c0_17] : memref<8x16xf32, #tpu.memory_space<vmem>>, vector<8x16xf32>
    tpu.vector_store %arg5[%c0_16, %c0_17], %38 {strides = array<i32>} : memref<8x16xf32, #tpu.memory_space<vmem>>, vector<8x16xf32>,
    return
  }
  func.func @transform_0(%arg0: i32, %arg1: i32) -> (i32, i32) {
    %c0_i32 = arith.constant 0 : i32
    %c0_i32_0 = arith.constant 0 : i32
    return %arg1, %c0_i32 : i32, i32
  }
  func.func @transform_1(%arg0: i32, %arg1: i32) -> (i32, i32) {
    %c0_i32 = arith.constant 0 : i32
    %c0_i32_0 = arith.constant 0 : i32
    return %arg1, %c0_i32 : i32, i32
  }
  func.func @transform_2(%arg0: i32, %arg1: i32) -> (i32, i32) {
    %c0_i32 = arith.constant 0 : i32
    %c0_i32_0 = arith.constant 0 : i32
    return %arg0, %c0_i32 : i32, i32
  }
  func.func @transform_3(%arg0: i32, %arg1: i32) -> (i32, i32) {
    %c0_i32 = arith.constant 0 : i32
    return %arg1, %arg0 : i32, i32
  }
}

</mosaic_0001>

<bundles_post_ra>
// kernel: tpu_custom_call.1
= control target key start
LH: loop header
LB: loop body
LE: loop exit
PB: predicated region body
PF: predicated region fallthrough
CT: control target
= control target key end

     0   :  { %8 = vsyncpa [#allocation3], 0  ;;  %s274_s0 = inlined_call_operand.vmem [shape: s32[8,1], index: 0, kind: input, shape index: {}]   ;;  %s275_s1 = inlined_call_operand.vmem [shape: f32[8,32], index: 1, kind: input, shape index: {}]   ;;  %s276_s2 = inlined_call_operand.hbm [shape: f32[16,32], index: 2, kind: input, shape index: {}]   ;;  %s277_s3 = inlined_call_operand.hbm [shape: f32[8,16], index: 3, kind: output, shape index: {}]  }
   0x1   :  { %9 = vsyncpa [#allocation4], 0  ;;  %s231_s12 = smov [#allocation2]  }
   0x2   :  { %s19_s13 = sshll.u32 %s231_s12, 4  ;;  %s20_s13 = int_to_ptr.vmem [resolvable:$true] %s19_s13 }
   0x3   :  { %s195_s14 = scalar_lea.vmem %s20_s13, 256  ;;  %p200_p1 = scmp.lt.s32.totalorder %s20_s13, %s20_s13 }
   0x4   :  { %p196_p0 = scmp.ne.s32.totalorder %s20_s13, %s195_s14  ;;  %p201_p2 = scmp.lt.s32.totalorder %s195_s14, %s195_s14 }
   0x6   :  { %p202_p3 = por %p201_p2, %p200_p1 }
   0x8   :  { %p203_p4 = pnand %p202_p3, %p196_p0 }
   0xa   :  { %206 = shalt.err (!%p203_p4)
}
   0xb   :  { %s232_s15 = smov 128   ;;  %s233_s16 = smov 8  }
   0xc   :  { %25 = dma.hbm_to_vmem [thread:$0]  %s276_s2, 256, %s20_s13, [#allocation3], %s232_s15, %s232_s15, %s233_s16  }
   0xd   :  { %227 = dma.done.wait [#allocation3], 256  }
   0xe   :  { %228 = vsyncadd [#allocation3], 4294967040  ;;  %v234_v0 = vmov 0.0   ;;  %vm235_vm0 = vmmov 0   ;;  %v236_v1 = vmov 0   ;;  %vm32_vm1 = vcmask 261120  }
   0xf   :  { %170 = vmatprep.subr.mxu0 %v234_v0  ;;  %174 = vmatprep.mubr.msk.f32.mxu0 %vm235_vm0, %v234_v0  ;;  %v31_v2 = vld [vmem:[#allocation2 + $0x8] sm:$0xff]  ;;  %v115_v3 = vld [vmem:[%s274_s0] sm:$0xff]  ;;  %v113_v6 = vlaneseq  ;;  %vm123_vm3 = vcmask 130048   ;;  %s237_s0 = smov [#allocation5]  }
  0x10   :  { %184 = vset.pattern.permute.xlu0 %v236_v1  ;;  %171 = vmatpush3.xpose.msk.msra.mxu0 %vm32_vm1, %v31_v2  ;;  %v30_v4 = vld [vmem:[#allocation2] sm:$0xff] }
  0x11   :  { %172 = vmatprep.subr.mxu0 %v234_v0  ;;  %119 = vperm.xlu0 %184, %v115_v3   ;;  %v29_v5 = vld [vmem:[%s275_s1] sm:$0xff]  ;;  %v114_v7 = vand.u32 127, %v113_v6  ;;  %s154_s1 = sshll.u32 %s237_s0, 4  ;;  %s155_s1 = int_to_ptr.vmem [resolvable:$true] %s154_s1 }
  0x12   :  { %s207_s22 = scalar_lea.vmem %s155_s1, 128  ;;  %p212_p6 = scmp.lt.s32.totalorder %s155_s1, %s155_s1 }
  0x13   :  { %p208_p5 = scmp.ne.s32.totalorder %s155_s1, %s207_s22  ;;  %p213_p7 = scmp.lt.s32.totalorder %s207_s22, %s207_s22 }
  0x14   :  { %173 = vmatpush3.xpose.msk.msra.mxu0 %vm32_vm1, %v30_v4 }
  0x15   :  { %p214_p8 = por %p213_p7, %p212_p6 }
  0x17   :  { %175 = vmatmul.mubr.msk.f32.vlgmr.msra.gmra.mxu0 %vm32_vm1, %v29_v5  ;;  %p215_p9 = pnand %p214_p8, %p208_p5 }
  0x8c   :  { %v120_v8 = vpop.permute.xlu0 %119 }
  0x8d   :  { %vm121_vm2 = vcmp.eq.s32.totalorder %v114_v7, %v120_v8 }
  0xd7   :  { %v108_v9 = vpop.f32.mrf.mxu0 }
  0xd8   :  { %v122_v10 = vsel %vm121_vm2, %v108_v9, 0.0 }
  0xd9   :  { %v176_v11 = vpop.f32.mrf.mxu0  ;;  %v124_v12 = vsel %vm123_vm3, %v122_v10, 0.0 }
  0xda   :  { %125 = vadd.xlane.f32.xlu0 %v124_v12 }
 0x163   :  { %v126_v13 = vpop.xlane.xlu0 %125 }
 0x164   :  { %v127_v14 = vmul.f32 0.033333335, %v126_v13 }
 0x166   :  { %v166_v15 = vclamps-f32 %v127_v14, 0.9999 }
 0x168   :  { %v130_v16 = vmul.f32 %v166_v15, %v166_v15  ;;  %v140_v24 = vmul.f32 0.87758255, %v166_v15 }
 0x16a   :  { %v131_v17 = vsub.f32 1.0, %v130_v16 }
 0x16c   :  { %v132_v18 = vmax.f32 %v131_v17, 0.0 }
 0x16e   :  { %185 = vrsqrt.f32 %v132_v18  ;;  %vm135_vm4 = vcmp.eq.f32.partialorder %v132_v18, inf  ;;  %v138_v21 = vand.u32 2147483648, %v132_v18  ;;  %vm137_vm5 = vcmp.eq.f32.partialorder %v132_v18, 0.0 }
 0x17b   :  { %v186_v19 = vpop.eup %185 }
 0x17c   :  { %v134_v20 = vmul.f32 %v186_v19, %v132_v18 }
 0x17e   :  { %v136_v22 = vsel %vm135_vm4, %v132_v18, %v134_v20 }
 0x17f   :  { %v139_v23 = vsel %vm137_vm5, %v138_v21, %v136_v22 }
 0x180   :  { %v141_v25 = vmul.f32 0.47942555, %v139_v23 }
 0x182   :  { %v142_v26 = vsub.f32 %v140_v24, %v141_v25 }
 0x184   :  { %v143_v27 = vsub.f32 %v142_v26, %v166_v15 }
 0x186   :  { %v144_v28 = vmul.f32 30.0, %v143_v27 }
 0x188   :  { %v145_v29 = vsel %vm121_vm2, %v144_v28, 0.0 }
 0x189   :  { %v146_v30 = vadd.f32 %v145_v29, %v108_v9 }
 0x18b   :  { %147 = vst.msk [vmem:[#allocation5] sm:$0xff] %vm123_vm3, %v146_v30 }
 0x18c   :  { %218 = shalt.err (!%p215_p9)
}
 0x18d   :  { %157 = dma.vmem_to_hbm [thread:$0]  %s155_s1, 128, %s277_s3, [#allocation4]  }
 0x18e   :  { %229 = dma.done.wait [#allocation4], 128  }
 0x18f   :  { %230 = vsyncadd [#allocation4], 4294967168 }
 0x190   :  { %161 = vsyncpa [#allocation3], 1 }
 0x191   :  { %162 = vsyncpa [#allocation4], 1 }

</bundles_post_ra>
